<compile_context>
chip_gen: v7x
topology: tpu7x:2x2x1
jax: 0.10.0
libtpu: 0.0.40
codegen_flags: <defaults>
</compile_context>

<pallas_src>
import functools

import jax
import jax.numpy as jnp
from jax.experimental import pallas as pl
from jax.experimental.pallas import tpu as pltpu

_LANES = 128
_TARGET_BLOCK_BYTES = 2 << 20        # ~2 MiB per input block per buffer
_MIN_SPLIT_BLOCK_BYTES = 512 << 10   # keep >=512 KiB blocks when splitting batch


# --------------------------------------------------------------------------
# Pallas kernel
# --------------------------------------------------------------------------
def _tversky_kernel(logits_ref, targets_ref, loss_ref, acc_ref,
                    *, alpha, beta, gamma, eps, rows_total, tile_rows):
    # logits_ref / targets_ref : (S, tile_rows, 128) native dtype
    # loss_ref                 : (S, 1, 1) f32 per-sample loss (written once)
    # acc_ref                  : (3, S, 128) f32 running lane-sums
    #                            [0]=sum(p), [1]=sum(t), [2]=sum(p*t)
    j = pl.program_id(1)

    @pl.when(j == 0)
    def _init():
        acc_ref[...] = jnp.zeros_like(acc_ref)

    x = logits_ref[...].astype(jnp.float32)
    t = targets_ref[...].astype(jnp.float32)
    # Single-EUP-push sigmoid: sigmoid(x) = 0.5 * (tanh(x/2) + 1).
    p = 0.5 * (jnp.tanh(0.5 * x) + 1.0)

    if rows_total % tile_rows != 0:        # static: ragged tail on pixel axis
        remaining = rows_total - j * tile_rows
        row_idx = jax.lax.broadcasted_iota(jnp.int32, p.shape, 1)
        keep = row_idx < remaining
        p = jnp.where(keep, p, 0.0)
        t = jnp.where(keep, t, 0.0)

    # Sublane-axis partial sums -> (S, 128) lane vectors, accumulated across
    # pixel tiles.
    acc_ref[0] += jnp.sum(p, axis=1)
    acc_ref[1] += jnp.sum(t, axis=1)
    acc_ref[2] += jnp.sum(p * t, axis=1)

    @pl.when(j == pl.num_programs(1) - 1)
    def _finalize():
        sp = jnp.sum(acc_ref[0], axis=-1, keepdims=True)   # (S, 1) sum(p)
        st = jnp.sum(acc_ref[1], axis=-1, keepdims=True)   # (S, 1) sum(t)
        tp = jnp.sum(acc_ref[2], axis=-1, keepdims=True)   # (S, 1) sum(p*t)
        fp = sp - tp                                        # sum((1-t) * p)
        fn = st - tp                                        # sum(t * (1-p))
        tversky = (gamma * tp) / (gamma * tp + alpha * fp + beta * fn + eps)
        loss = jnp.where(st > 0.0, 1.0 - tversky, sp / 100.0)
        loss_ref[...] = loss[..., None].astype(loss_ref.dtype)


# --------------------------------------------------------------------------
# Tiling heuristics
# --------------------------------------------------------------------------
def _sublane_multiple(dtype):
    # Sublane tiling: 8 rows for 4-byte, 16 for 2-byte, 32 for 1-byte dtypes.
    return max(8, 32 // jnp.dtype(dtype).itemsize)


def _largest_divisor_leq(n, cap):
    cap = max(1, min(n, cap))
    for d in range(cap, 0, -1):
        if n % d == 0:
            return d
    return 1


def _choose_tiling(n, r, max_itemsize, sub_mult):
    """Pick (samples_per_block S, rows_per_block) targeting ~2 MiB blocks."""
    row_bytes = _LANES * max_itemsize
    rows_budget = max(sub_mult, _TARGET_BLOCK_BYTES // row_bytes)
    if r <= rows_budget:
        tile_rows = r                                   # full sample per step
        s = _largest_divisor_leq(n, rows_budget // r)
        if s == n and n >= 2:
            # Prefer >=2 blocks on the parallel batch axis (v7x has 2 TCs),
            # as long as the block stays big enough to amortize step overhead.
            s_half = _largest_divisor_leq(n, n // 2)
            if (s_half * tile_rows * row_bytes >= _MIN_SPLIT_BLOCK_BYTES
                    or s * tile_rows * row_bytes < 2 * _MIN_SPLIT_BLOCK_BYTES):
                s = s_half
    else:
        tile_rows = (rows_budget // sub_mult) * sub_mult
        s = 1
    return s, tile_rows


# --------------------------------------------------------------------------
# Wrapper
# --------------------------------------------------------------------------
@functools.partial(jax.jit, static_argnames=("alpha", "beta", "gamma", "eps"))
def tversky_loss_pallas(logits, targets, alpha=0.7, beta=0.3, gamma=10.0,
                        eps=1e-7):
    """logits: (N, 1, H, W); targets: (N, 1, H, W) or (N, H, W) -> scalar."""
    n = logits.shape[0]
    logits2d = logits.reshape(n, -1)      # metadata-only reshape (contiguous)
    targets2d = targets.reshape(n, -1)
    hw = logits2d.shape[1]

    if hw % _LANES:
        # Rare fallback: pad <=127 pixels/sample so HW reshapes to (rows,128).
        # sigmoid(-1e9) == 0 (also via tanh) and target == 0 -> no contribution.
        pad = _LANES - hw % _LANES
        logits2d = jnp.pad(logits2d.astype(jnp.float32), ((0, 0), (0, pad)),
                           constant_values=-1e9)
        targets2d = jnp.pad(targets2d.astype(jnp.float32), ((0, 0), (0, pad)),
                            constant_values=0.0)
        hw += pad

    r = hw // _LANES                      # 128-pixel rows per sample
    max_itemsize = max(logits2d.dtype.itemsize, targets2d.dtype.itemsize)
    sub_mult = max(_sublane_multiple(logits2d.dtype),
                   _sublane_multiple(targets2d.dtype))
    s, tile_rows = _choose_tiling(n, r, max_itemsize, sub_mult)

    logits3d = logits2d.reshape(n, r, _LANES)     # free reshape
    targets3d = targets2d.reshape(n, r, _LANES)

    grid = (n // s, pl.cdiv(r, tile_rows))
    tile_spec = pl.BlockSpec((s, tile_rows, _LANES), lambda i, j: (i, j, 0))

    kernel = functools.partial(
        _tversky_kernel, alpha=float(alpha), beta=float(beta),
        gamma=float(gamma), eps=float(eps), rows_total=r, tile_rows=tile_rows)

    cost = pl.CostEstimate(
        flops=int(6 * n * hw),
        transcendentals=int(n * hw),
        bytes_accessed=int(n * hw * (logits2d.dtype.itemsize
                                     + targets2d.dtype.itemsize) + n * 4),
    )

    per_sample = pl.pallas_call(
        kernel,
        out_shape=jax.ShapeDtypeStruct((n, 1, 1), jnp.float32),
        grid_spec=pltpu.PrefetchScalarGridSpec(
            num_scalar_prefetch=0,
            grid=grid,
            in_specs=[tile_spec, tile_spec],
            out_specs=pl.BlockSpec((s, 1, 1), lambda i, j: (i, 0, 0)),
            scratch_shapes=[pltpu.VMEM((3, s, _LANES), jnp.float32)],
        ),
        compiler_params=pltpu.CompilerParams(
            dimension_semantics=("parallel", "arbitrary")),
        cost_estimate=cost,
    )(logits3d, targets3d)

    # torch.stack(losses).mean()
    return jnp.mean(per_sample)


# --------------------------------------------------------------------------
# Pure-JAX reference for correctness check
# --------------------------------------------------------------------------
def tversky_loss_ref(logits, targets, alpha=0.7, beta=0.3, gamma=10.0,
                     eps=1e-7):
    n = logits.shape[0]
    p = jax.nn.sigmoid(logits.astype(jnp.float32)).reshape(n, -1)
    t = targets.astype(jnp.float32).reshape(n, -1)
    tp = jnp.sum(p * t, axis=1)
    fp = jnp.sum((1.0 - t) * p, axis=1)
    fn = jnp.sum(t * (1.0 - p), axis=1)
    tversky = gamma * tp / (gamma * tp + alpha * fp + beta * fn + eps)
    loss_fg = 1.0 - tversky
    loss_bg = jnp.sum(p, axis=1) / 100.0
    has_fg = jnp.sum(t, axis=1) > 0
    return jnp.mean(jnp.where(has_fg, loss_fg, loss_bg))


if __name__ == "__main__":
    key = jax.random.PRNGKey(0)
    k_logits, k_targets = jax.random.split(key)

    N, H, W = 2, 16, 16
    logits = jax.random.normal(k_logits, (N, 1, H, W), jnp.float32)
    # sample 0: mixed foreground/background; sample 1: all-background
    # (exercises the false-positive-penalty branch of the loss)
    targets = (jax.random.uniform(k_targets, (N, 1, H, W)) > 0.5).astype(
        jnp.float32)
    targets = targets.at[1].set(0.0)

    loss = tversky_loss_pallas(logits, targets)
    loss = jax.block_until_ready(loss)

    ref = tversky_loss_ref(logits, targets)
    assert loss.shape == ()
    assert jnp.allclose(loss, ref, atol=1e-5, rtol=1e-5), (loss, ref)

    print("KERNEL_OK")
</pallas_src>

<mosaic_0001>
module attributes {stable_mosaic.version = 11 : i64} {
  func.func @_tversky_kernel(%arg0: i32, %arg1: i32, %arg2: memref<1x2x128xf32, #tpu.memory_space<vmem>>, %arg3: memref<1x2x128xf32, #tpu.memory_space<vmem>>, %arg4: memref<1x1x1xf32, #tpu.memory_space<vmem>>, %arg5: memref<3x1x128xf32, #tpu.memory_space<vmem>>) attributes {dimension_semantics = [#tpu.dimension_semantics<parallel>, #tpu.dimension_semantics<arbitrary>], iteration_bounds = array<i64: 2, 1>, scalar_prefetch = 0 : i64, scratch_operands = 1 : i64, tpu.core_type = #tpu.core_type<tc>, window_params = [{transform_indices = @transform_0, window_bounds = array<i64: 1, 2, 128>}, {transform_indices = @transform_1, window_bounds = array<i64: 1, 2, 128>}, {transform_indices = @transform_2, window_bounds = array<i64: 1, 1, 1>}]} {
    %c0_i32 = arith.constant 0 : i32
    %0 = arith.cmpi eq, %arg1, %c0_i32 : i32
    %1 = arith.extui %0 : i1 to i32
    %c0_i32_0 = arith.constant 0 : i32
    %2 = arith.cmpi ne, %1, %c0_i32_0 : i32
    scf.if %2 {
      %cst_29 = arith.constant 0.000000e+00 : f32
      %37 = vector.broadcast %cst_29 : f32 to vector<3x1x128xf32>
      %c0_30 = arith.constant 0 : index
      %c0_31 = arith.constant 0 : index
      %c0_32 = arith.constant 0 : index
      %38 = vector.load %arg5[%c0_30, %c0_31, %c0_32] : memref<3x1x128xf32, #tpu.memory_space<vmem>>, vector<3x1x128xf32>
      tpu.vector_store %arg5[%c0_30, %c0_31, %c0_32], %37 {strides = array<i32>} : memref<3x1x128xf32, #tpu.memory_space<vmem>>, vector<3x1x128xf32>,
    } else {
    }
    %c0 = arith.constant 0 : index
    %c0_1 = arith.constant 0 : index
    %c0_2 = arith.constant 0 : index
    %3 = vector.load %arg2[%c0, %c0_1, %c0_2] : memref<1x2x128xf32, #tpu.memory_space<vmem>>, vector<1x2x128xf32>
    %c0_3 = arith.constant 0 : index
    %c0_4 = arith.constant 0 : index
    %c0_5 = arith.constant 0 : index
    %4 = vector.load %arg3[%c0_3, %c0_4, %c0_5] : memref<1x2x128xf32, #tpu.memory_space<vmem>>, vector<1x2x128xf32>
    %cst = arith.constant 5.000000e-01 : f32
    %5 = vector.broadcast %cst : f32 to vector<1x2x128xf32>
    %6 = arith.mulf %5, %3 : vector<1x2x128xf32>
    %7 = math.tanh %6 : vector<1x2x128xf32>
    %cst_6 = arith.constant 1.000000e+00 : f32
    %8 = vector.broadcast %cst_6 : f32 to vector<1x2x128xf32>
    %9 = arith.addf %7, %8 : vector<1x2x128xf32>
    %cst_7 = arith.constant 5.000000e-01 : f32
    %10 = vector.broadcast %cst_7 : f32 to vector<1x2x128xf32>
    %11 = arith.mulf %10, %9 : vector<1x2x128xf32>
    %c0_8 = arith.constant 0 : index
    %c0_9 = arith.constant 0 : index
    %c0_10 = arith.constant 0 : index
    %12 = vector.load %arg5[%c0_8, %c0_9, %c0_10] : memref<3x1x128xf32, #tpu.memory_space<vmem>>, vector<1x1x128xf32>
    %13 = vector.shape_cast %12 : vector<1x1x128xf32> to vector<1x128xf32>
    %cst_11 = arith.constant dense<0.000000e+00> : vector<1x128xf32>
    %14 = vector.multi_reduction <add>, %11, %cst_11 [1] : vector<1x2x128xf32> to vector<1x128xf32>
    %15 = arith.addf %13, %14 : vector<1x128xf32>
    %c0_12 = arith.constant 0 : index
    %c0_13 = arith.constant 0 : index
    %c0_14 = arith.constant 0 : index
    %16 = vector.load %arg5[%c0_12, %c0_13, %c0_14] : memref<3x1x128xf32, #tpu.memory_space<vmem>>, vector<1x1x128xf32>
    %17 = vector.shape_cast %16 : vector<1x1x128xf32> to vector<1x128xf32>
    %18 = vector.shape_cast %15 : vector<1x128xf32> to vector<1x1x128xf32>
    tpu.vector_store %arg5[%c0_12, %c0_13, %c0_14], %18 {strides = array<i32>} : memref<3x1x128xf32, #tpu.memory_space<vmem>>, vector<1x1x128xf32>,
    %c1 = arith.constant 1 : index
    %c0_15 = arith.constant 0 : index
    %c0_16 = arith.constant 0 : index
    %19 = vector.load %arg5[%c1, %c0_15, %c0_16] : memref<3x1x128xf32, #tpu.memory_space<vmem>>, vector<1x1x128xf32>
    %20 = vector.shape_cast %19 : vector<1x1x128xf32> to vector<1x128xf32>
    %cst_17 = arith.constant dense<0.000000e+00> : vector<1x128xf32>
    %21 = vector.multi_reduction <add>, %4, %cst_17 [1] : vector<1x2x128xf32> to vector<1x128xf32>
    %22 = arith.addf %20, %21 : vector<1x128xf32>
    %c1_18 = arith.constant 1 : index
    %c0_19 = arith.constant 0 : index
    %c0_20 = arith.constant 0 : index
    %23 = vector.load %arg5[%c1_18, %c0_19, %c0_20] : memref<3x1x128xf32, #tpu.memory_space<vmem>>, vector<1x1x128xf32>
    %24 = vector.shape_cast %23 : vector<1x1x128xf32> to vector<1x128xf32>
    %25 = vector.shape_cast %22 : vector<1x128xf32> to vector<1x1x128xf32>
    tpu.vector_store %arg5[%c1_18, %c0_19, %c0_20], %25 {strides = array<i32>} : memref<3x1x128xf32, #tpu.memory_space<vmem>>, vector<1x1x128xf32>,
    %c2 = arith.constant 2 : index
    %c0_21 = arith.constant 0 : index
    %c0_22 = arith.constant 0 : index
    %26 = vector.load %arg5[%c2, %c0_21, %c0_22] : memref<3x1x128xf32, #tpu.memory_space<vmem>>, vector<1x1x128xf32>
    %27 = vector.shape_cast %26 : vector<1x1x128xf32> to vector<1x128xf32>
    %28 = arith.mulf %11, %4 : vector<1x2x128xf32>
    %cst_23 = arith.constant dense<0.000000e+00> : vector<1x128xf32>
    %29 = vector.multi_reduction <add>, %28, %cst_23 [1] : vector<1x2x128xf32> to vector<1x128xf32>
    %30 = arith.addf %27, %29 : vector<1x128xf32>
    %c2_24 = arith.constant 2 : index
    %c0_25 = arith.constant 0 : index
    %c0_26 = arith.constant 0 : index
    %31 = vector.load %arg5[%c2_24, %c0_25, %c0_26] : memref<3x1x128xf32, #tpu.memory_space<vmem>>, vector<1x1x128xf32>
    %32 = vector.shape_cast %31 : vector<1x1x128xf32> to vector<1x128xf32>
    %33 = vector.shape_cast %30 : vector<1x128xf32> to vector<1x1x128xf32>
    tpu.vector_store %arg5[%c2_24, %c0_25, %c0_26], %33 {strides = array<i32>} : memref<3x1x128xf32, #tpu.memory_space<vmem>>, vector<1x1x128xf32>,
    %c0_i32_27 = arith.constant 0 : i32
    %34 = arith.cmpi eq, %arg1, %c0_i32_27 : i32
    %35 = arith.extui %34 : i1 to i32
    %c0_i32_28 = arith.constant 0 : i32
    %36 = arith.cmpi ne, %35, %c0_i32_28 : i32
    scf.if %36 {
      %c0_29 = arith.constant 0 : index
      %c0_30 = arith.constant 0 : index
      %c0_31 = arith.constant 0 : index
      %37 = vector.load %arg5[%c0_29, %c0_30, %c0_31] : memref<3x1x128xf32, #tpu.memory_space<vmem>>, vector<1x1x128xf32>
      %38 = vector.shape_cast %37 : vector<1x1x128xf32> to vector<1x128xf32>
      %cst_32 = arith.constant dense<0.000000e+00> : vector<1xf32>
      %39 = vector.multi_reduction <add>, %38, %cst_32 [1] : vector<1x128xf32> to vector<1xf32>
      %40 = vector.shape_cast %39 : vector<1xf32> to vector<1x1xf32>
      %c1_33 = arith.constant 1 : index
      %c0_34 = arith.constant 0 : index
      %c0_35 = arith.constant 0 : index
      %41 = vector.load %arg5[%c1_33, %c0_34, %c0_35] : memref<3x1x128xf32, #tpu.memory_space<vmem>>, vector<1x1x128xf32>
      %42 = vector.shape_cast %41 : vector<1x1x128xf32> to vector<1x128xf32>
      %cst_36 = arith.constant dense<0.000000e+00> : vector<1xf32>
      %43 = vector.multi_reduction <add>, %42, %cst_36 [1] : vector<1x128xf32> to vector<1xf32>
      %44 = vector.shape_cast %43 : vector<1xf32> to vector<1x1xf32>
      %c2_37 = arith.constant 2 : index
      %c0_38 = arith.constant 0 : index
      %c0_39 = arith.constant 0 : index
      %45 = vector.load %arg5[%c2_37, %c0_38, %c0_39] : memref<3x1x128xf32, #tpu.memory_space<vmem>>, vector<1x1x128xf32>
      %46 = vector.shape_cast %45 : vector<1x1x128xf32> to vector<1x128xf32>
      %cst_40 = arith.constant dense<0.000000e+00> : vector<1xf32>
      %47 = vector.multi_reduction <add>, %46, %cst_40 [1] : vector<1x128xf32> to vector<1xf32>
      %48 = vector.shape_cast %47 : vector<1xf32> to vector<1x1xf32>
      %49 = arith.subf %40, %48 : vector<1x1xf32>
      %50 = arith.subf %44, %48 : vector<1x1xf32>
      %cst_41 = arith.constant 1.000000e+01 : f32
      %51 = vector.broadcast %cst_41 : f32 to vector<1x1xf32>
      %52 = arith.mulf %51, %48 : vector<1x1xf32>
      %cst_42 = arith.constant 1.000000e+01 : f32
      %53 = vector.broadcast %cst_42 : f32 to vector<1x1xf32>
      %54 = arith.mulf %53, %48 : vector<1x1xf32>
      %cst_43 = arith.constant 0.699999988 : f32
      %55 = vector.broadcast %cst_43 : f32 to vector<1x1xf32>
      %56 = arith.mulf %55, %49 : vector<1x1xf32>
      %57 = arith.addf %54, %56 : vector<1x1xf32>
      %cst_44 = arith.constant 3.000000e-01 : f32
      %58 = vector.broadcast %cst_44 : f32 to vector<1x1xf32>
      %59 = arith.mulf %58, %50 : vector<1x1xf32>
      %60 = arith.addf %57, %59 : vector<1x1xf32>
      %cst_45 = arith.constant 1.000000e-07 : f32
      %61 = vector.broadcast %cst_45 : f32 to vector<1x1xf32>
      %62 = arith.addf %60, %61 : vector<1x1xf32>
      %63 = arith.divf %52, %62 : vector<1x1xf32>
      %cst_46 = arith.constant 0.000000e+00 : f32
      %64 = vector.broadcast %cst_46 : f32 to vector<1x1xf32>
      %65 = arith.cmpf ogt, %44, %64 : vector<1x1xf32>
      %cst_47 = arith.constant 1.000000e+00 : f32
      %66 = vector.broadcast %cst_47 : f32 to vector<1x1xf32>
      %67 = arith.subf %66, %63 : vector<1x1xf32>
      %cst_48 = arith.constant 1.000000e+02 : f32
      %68 = vector.broadcast %cst_48 : f32 to vector<1x1xf32>
      %69 = arith.divf %40, %68 : vector<1x1xf32>
      %70 = arith.select %65, %67, %69 : vector<1x1xi1>, vector<1x1xf32>
      %71 = vector.shape_cast %70 : vector<1x1xf32> to vector<1x1x1xf32>
      %c0_49 = arith.constant 0 : index
      %c0_50 = arith.constant 0 : index
      %c0_51 = arith.constant 0 : index
      %72 = vector.load %arg4[%c0_49, %c0_50, %c0_51] : memref<1x1x1xf32, #tpu.memory_space<vmem>>, vector<1x1x1xf32>
      tpu.vector_store %arg4[%c0_49, %c0_50, %c0_51], %71 {strides = array<i32>} : memref<1x1x1xf32, #tpu.memory_space<vmem>>, vector<1x1x1xf32>,
    } else {
    }
    return
  }
  func.func @transform_0(%arg0: i32, %arg1: i32) -> (i32, i32, i32) {
    %c0_i32 = arith.constant 0 : i32
    %c0_i32_0 = arith.constant 0 : i32
    return %arg0, %arg1, %c0_i32 : i32, i32, i32
  }
  func.func @transform_1(%arg0: i32, %arg1: i32) -> (i32, i32, i32) {
    %c0_i32 = arith.constant 0 : i32
    %c0_i32_0 = arith.constant 0 : i32
    return %arg0, %arg1, %c0_i32 : i32, i32, i32
  }
  func.func @transform_2(%arg0: i32, %arg1: i32) -> (i32, i32, i32) {
    %c0_i32 = arith.constant 0 : i32
    %c0_i32_0 = arith.constant 0 : i32
    %c0_i32_1 = arith.constant 0 : i32
    return %arg0, %c0_i32, %c0_i32_0 : i32, i32, i32
  }
}

</mosaic_0001>

<bundles_post_ra>
// kernel: tversky_loss_pallas.1
= control target key start
LH: loop header
LB: loop body
LE: loop exit
PB: predicated region body
PF: predicated region fallthrough
CT: control target
= control target key end

     0   :  { %s419_s9 = smov 0   ;;  %s421_s10 = smov 0   ;;  %s465_s0 = inlined_call_operand.vmem [shape: f32[2,2,128], index: 0, kind: input, shape index: {}]   ;;  %s466_s1 = inlined_call_operand.vmem [shape: f32[2,2,128], index: 1, kind: input, shape index: {}]   ;;  %s467_s2 = inlined_call_operand.vmem [shape: f32[2,1,1], index: 2, kind: output, shape index: {}]  }
   0x1   :  { %s423_s11 = smov 0  }
   0x2 LB: > { %s24_s12 = sadd.s32 1, %s397_s10  ;;  %p345_p0 = scmp.ge.s32.totalorder %s401_s11, 1  ;;  %s401_s11 = sphi %s423_s11, %s12_s11   ;;  %s397_s10 = sphi %s421_s10, %s469_s10   ;;  %s393_s9 = sphi %s419_s9, %s468_s9  }
   0x3   : > { %p26_p1 = scmp.ge.s32.totalorder %s24_s12, 2  ;;  %p142_p2 = scmp.lt.s32.totalorder %s401_s11, 3 }
   0x5   : > { %s471_s12 = smov (%p26_p1, %s24_s12), 0  ;;  %p143_p3 = pnand %p345_p0, %p142_p2 }
   0x6   : > { %p171_p4 = scmp.lt.s32.totalorder (!%p143_p3), %s393_s9, 1  ;;  %v403_v0 = vmov (!%p143_p3), 0.0   ;;  %vm202_vm0 = vcmask (!%p143_p3), 1041408   ;;  %vm239_vm1 = vcmask (!%p143_p3), 1040384   ;;  %vm266_vm2 = vcmask (!%p143_p3), 0  }
   0x7   : > { %146 = sbr.rel (%p143_p3) target bundleno = 232 (0xe8), region = 28  ;;  %192 = vst [vmem:[#allocation2] sm:$0x1] (!%p143_p3), %v403_v0  ;;  %193 = vst [vmem:[#allocation2 + $0x1] sm:$0x1] (!%p143_p3), %v403_v0 }
   0x8   : > { %194 = vst [vmem:[#allocation2 + $0x2] sm:$0x1] (!%p143_p3), %v403_v0 }
   0xe   : > { %s473_s9 = smov (!%p171_p4, %s393_s9), 1  ;;  %v213_v10 = vld [vmem:[#allocation2 + $0x1] sm:$0x1]  ;;  %v201_v30 = vld [vmem:[#allocation2] sm:$0x1] }
   0xf   : > { %s346_s13 = sshll.u32 %s473_s9, 1  ;;  %v224_v33 = vld [vmem:[#allocation2 + $0x2] sm:$0x1]  ;;  %s187_s22 = scalar_lea.vmem %s467_s2, %s473_s9 }
  0x10   : > { %s177_s16 = scalar_lea.vmem %s465_s0, %s346_s13  ;;  %s184_s19 = scalar_lea.vmem %s466_s1, %s346_s13 }
  0x11   : > { %v195_v1 = vld [vmem:[%s177_s16] sm:$0x3] }
  0x12   : > { %v196_v2 = vld [vmem:[%s184_s19] sm:$0x3]  ;;  %v197_v3 = vmul.f32 0.5, %v195_v1 }
  0x13   : > { %v214_v4 = vsel %vm202_vm0, %v196_v2, 0.0 }
  0x14   : > { %v215_v5 = vrot.slane %v214_v4, 4  ;;  %375 = vtanh.f32 %v197_v3 }
  0x16   : > { %v216_v6 = vadd.f32 %v215_v5, %v214_v4 }
  0x18   : > { %v217_v7 = vrot.slane %v216_v6, 2 }
  0x1a   : > { %v218_v8 = vadd.f32 %v217_v7, %v216_v6 }
  0x1c   : > { %v219_v9 = vrot.slane %v218_v8, 1 }
  0x1e   : > { %v220_v11 = vadd.f32 %v219_v9, %v218_v8  ;;  %v376_v12 = vpop.eup %375 }
  0x1f   : > { %v199_v13 = vadd.f32 1.0, %v376_v12 }
  0x20   : > { %v221_v14 = vadd.f32 %v220_v11, %v213_v10 }
  0x21   : > { %v200_v15 = vmul.f32 0.5, %v199_v13 }
  0x22   : > { %222 = vst [vmem:[#allocation2 + $0x1] sm:$0x1] %v221_v14 }
  0x23   : > { %v203_v16 = vsel %vm202_vm0, %v200_v15, 0.0  ;;  %v225_v17 = vmul.f32 %v200_v15, %v196_v2 }
  0x24   : > { %v204_v18 = vrot.slane %v203_v16, 4 }
  0x25   : > { %v226_v19 = vsel %vm202_vm0, %v225_v17, 0.0 }
  0x26   : > { %v205_v20 = vadd.f32 %v204_v18, %v203_v16  ;;  %v227_v21 = vrot.slane %v226_v19, 4 }
  0x28   : > { %v206_v22 = vrot.slane %v205_v20, 2  ;;  %v228_v24 = vadd.f32 %v227_v21, %v226_v19 }
  0x29   : > { %v243_v23 = vld [vmem:[#allocation2 + $0x1] sm:$0x1] }
  0x2a   : > { %v244_v25 = vsel %vm239_vm1, %v243_v23, 0.0  ;;  %v207_v26 = vadd.f32 %v206_v22, %v205_v20  ;;  %v229_v27 = vrot.slane %v228_v24, 2 }
  0x2b   : > { %245 = vadd.xlane.f32.xlu1 %v244_v25 }
  0x2c   : > { %v208_v28 = vrot.slane %v207_v26, 1  ;;  %v230_v29 = vadd.f32 %v229_v27, %v228_v24 }
  0x2e   : > { %v209_v31 = vadd.f32 %v208_v28, %v207_v26  ;;  %v231_v32 = vrot.slane %v230_v29, 1 }
  0x30   : > { %v210_v34 = vadd.f32 %v209_v31, %v201_v30  ;;  %v232_v35 = vadd.f32 %v231_v32, %v230_v29 }
  0x32   : > { %211 = vst [vmem:[#allocation2] sm:$0x1] %v210_v34  ;;  %v233_v36 = vadd.f32 %v232_v35, %v224_v33 }
  0x34   : > { %234 = vst [vmem:[#allocation2 + $0x2] sm:$0x1] %v233_v36 }
  0x39   : > { %v238_v37 = vld [vmem:[#allocation2] sm:$0x1] }
  0x3a   : > { %v240_v38 = vsel %vm239_vm1, %v238_v37, 0.0 }
  0x3b   : > { %241 = vadd.xlane.f32.xlu0 %v240_v38  ;;  %v247_v39 = vld [vmem:[#allocation2 + $0x2] sm:$0x1] }
  0x3c   : > { %v248_v40 = vsel %vm239_vm1, %v247_v39, 0.0 }
  0x3f   : > { %249 = vadd.xlane.f32.xlu0 %v248_v40 }
  0xb8   : > { %v246_v42 = vpop.xlane.xlu1 %245 }
  0xb9   : > { %vm261_vm3 = vcmp.gt.f32.partialorder %v246_v42, 0.0 }
  0xc8   : > { %v242_v41 = vpop.xlane.xlu0 %241 }
  0xc9   : > { %v264_v54 = vmul.f32 0.01, %v242_v41 }
  0xcc   : > { %v250_v43 = vpop.xlane.xlu0 %249 }
  0xcd   : > { %v251_v44 = vsub.f32 %v242_v41, %v250_v43  ;;  %v252_v45 = vsub.f32 %v246_v42, %v250_v43  ;;  %v253_v46 = vmul.f32 10.0, %v250_v43 }
  0xcf   : > { %v254_v47 = vmul.f32 0.7, %v251_v44  ;;  %v256_v49 = vmul.f32 0.3, %v252_v45 }
  0xd1   : > { %v255_v48 = vadd.f32 %v254_v47, %v253_v46 }
  0xd3   : > { %v257_v50 = vadd.f32 %v256_v49, %v255_v48 }
  0xd5   : > { %v258_v51 = vadd.f32 1e-07, %v257_v50 }
  0xd7   : > { %377 = vrcp.f32 %v258_v51 }
  0xe1   : > { %v378_v52 = vpop.eup %377 }
  0xe2   : > { %v260_v53 = vmul.f32 %v378_v52, %v253_v46 }
  0xe4   : > { %v262_v55 = vsub.f32 1.0, %v260_v53 }
  0xe6   : > { %v265_v56 = vsel %vm261_vm3, %v262_v55, %v264_v54 }
  0xe7   : > { %267 = vst.msk [vmem:[%s187_s22] sm:$0x1] %vm266_vm2, %v265_v56 }
  0xe8 PF: > { %s12_s11 = sadd.s32 1, %s401_s11   ;;  %s468_s9 = smov %s397_s10 }
  0xe9   : > { %p9_p5 = scmp.ge.s32.totalorder %s12_s11, 4   ;;  %s469_s10 = smov %s471_s12 }
  0xeb   :  { %11 = sbr.rel (!%p9_p5) target bundleno = 2 (0x2), region = 71 }

</bundles_post_ra>
